<compile_context>
chip_gen: v6e
topology: v6e:2x2x1
jax: 0.10.0
libtpu: 0.0.40
codegen_flags: <defaults>
</compile_context>

<pallas_src>
import functools
import math

import jax
import jax.numpy as jnp
from jax.experimental import pallas as pl
from jax.experimental.pallas import tpu as pltpu


def _round_up(x, m):
    return ((x + m - 1) // m) * m


def _cdiv(a, b):
    return (a + b - 1) // b


def _default_epilogue_dtype(compute_dtype):
    """bf16 epilogue only where the VPU has native bf16 (v6e / v7x)."""
    if jnp.dtype(compute_dtype) != jnp.dtype(jnp.bfloat16):
        return jnp.dtype(jnp.float32)
    try:
        kind = jax.devices()[0].device_kind.lower()
    except Exception:
        return jnp.dtype(jnp.float32)
    if "v6" in kind or "v7" in kind:
        return jnp.dtype(jnp.bfloat16)
    return jnp.dtype(jnp.float32)


def _value_net_kernel(xT_ref, w1T_ref, b1_ref, w2T_ref, b2_ref, w3_ref, b3_ref,
                      o_ref, *, acc_dtype):
    # Feature-major / batch-on-lanes layout: everything is (features, TILE_B).
    xT = xT_ref[...]                          # (state_dim, TILE_B), compute dtype
    cdt = xT.dtype
    zero = jnp.zeros((), acc_dtype)

    # layer 1: h1T = relu(w1T @ xT + b1), shape (layer_dim, TILE_B)
    h1 = jnp.dot(w1T_ref[...], xT, preferred_element_type=acc_dtype)
    h1 = jnp.maximum(h1 + b1_ref[...], zero)          # b1: (layer_dim, 1)

    # layer 2: h2T = relu(w2T @ h1T + b2), shape (layer_dim, TILE_B)
    h2 = jnp.dot(w2T_ref[...], h1.astype(cdt), preferred_element_type=acc_dtype)
    h2 = jnp.maximum(h2 + b2_ref[...], zero)

    # head: (1, layer_dim) @ (layer_dim, TILE_B) -> (1, TILE_B), f32 accumulate.
    v = jnp.dot(w3_ref[...], h2.astype(cdt), preferred_element_type=jnp.float32)
    o_ref[...] = (v + b3_ref[...]).astype(o_ref.dtype)   # lane-dense row


def value_network_forward(state, params, *, tile_b=4096,
                          compute_dtype=jnp.bfloat16, epilogue_dtype=None):
    """Fused MLP forward. state: (B, state_dim) -> (B, 1) float32."""
    w1, b1, w2, b2, w3, b3 = params
    B, state_dim = state.shape
    layer_dim = w1.shape[1]

    cdt = jnp.dtype(compute_dtype)
    edt = (_default_epilogue_dtype(cdt) if epilogue_dtype is None
           else jnp.dtype(epilogue_dtype))

    # --- batch tiling: few big lane-aligned tiles, even count when multi-tile
    #     (so v7x's two TensorCores get equal work via the "parallel" axis).
    n_tiles = max(1, _cdiv(B, tile_b))
    if n_tiles > 1 and n_tiles % 2 == 1:
        n_tiles += 1
    tile = _round_up(_cdiv(B, n_tiles), 128)   # lane-dense output blocks
    b_pad = tile * n_tiles

    # Feature-major input: (state_dim, B) padded along lanes.
    xT = state.astype(cdt).T
    if b_pad != B:
        xT = jnp.pad(xT, ((0, 0), (0, b_pad - B)))

    # Transposed / row-layout params (tiny; VMEM-resident across the grid).
    w1T = w1.T.astype(cdt)                       # (layer_dim, state_dim)
    w2T = w2.T.astype(cdt)                       # (layer_dim, layer_dim)
    w3r = w3.reshape(1, layer_dim).astype(cdt)   # (1, layer_dim)
    b1c = b1.reshape(layer_dim, 1).astype(edt)   # broadcast along lanes
    b2c = b2.reshape(layer_dim, 1).astype(edt)
    b3f = b3.reshape(1, 1).astype(jnp.float32)

    def _resident(arr):                          # constant index_map -> resident
        return pl.BlockSpec(arr.shape, lambda i: (0,) * arr.ndim)

    flops = 2 * b_pad * layer_dim * (state_dim + layer_dim + 1)
    bytes_accessed = (
        b_pad * state_dim * cdt.itemsize                          # xT
        + (state_dim + layer_dim + 1) * layer_dim * cdt.itemsize  # weights
        + 2 * layer_dim * edt.itemsize + 4                        # biases
        + b_pad * 4)                                              # output

    kernel = functools.partial(_value_net_kernel, acc_dtype=edt)

    out_row = pl.pallas_call(
        kernel,
        out_shape=jax.ShapeDtypeStruct((1, b_pad), jnp.float32),
        grid=(n_tiles,),
        in_specs=[
            pl.BlockSpec((state_dim, tile), lambda i: (0, i)),    # streamed xT
            _resident(w1T), _resident(b1c),
            _resident(w2T), _resident(b2c),
            _resident(w3r), _resident(b3f),
        ],
        out_specs=pl.BlockSpec((1, tile), lambda i: (0, i)),      # lane-dense
        compiler_params=pltpu.CompilerParams(
            dimension_semantics=("parallel",),
            vmem_limit_bytes=32 * 1024 * 1024),
        cost_estimate=pl.CostEstimate(
            flops=int(flops), transcendentals=0,
            bytes_accessed=int(bytes_accessed)),
    )(xT, w1T, b1c, w2T, b2c, w3r, b3f)

    # Back to the PyTorch (B, 1) column layout; drop padded columns.
    return out_row.reshape(b_pad, 1)[:B]


def value_network_reference(state, params, compute_dtype=jnp.bfloat16,
                            epilogue_dtype=jnp.float32):
    """Plain-JAX reference mirroring the kernel's dtype strategy."""
    w1, b1, w2, b2, w3, b3 = params
    cdt = jnp.dtype(compute_dtype)
    edt = jnp.dtype(epilogue_dtype)
    zero = jnp.zeros((), edt)
    x = state.astype(cdt)
    h1 = jnp.maximum(
        jnp.dot(x, w1.astype(cdt), preferred_element_type=edt)
        + b1.astype(edt), zero)
    h2 = jnp.maximum(
        jnp.dot(h1.astype(cdt), w2.astype(cdt), preferred_element_type=edt)
        + b2.astype(edt), zero)
    return (jnp.dot(h2.astype(cdt), w3.astype(cdt),
                    preferred_element_type=jnp.float32)
            + b3.astype(jnp.float32))


def init_value_network_params(key, state_dim, layer_dim, init_w=0.003):
    """Init matching PyTorch defaults:
    linear1/linear2: U(-1/sqrt(fan_in), 1/sqrt(fan_in)) for weight and bias;
    linear3: U(-init_w, init_w). Weights stored as (in_dim, out_dim)."""
    k1, k2, k3, k4, k5, k6 = jax.random.split(key, 6)

    bound1 = 1.0 / math.sqrt(state_dim)
    w1 = jax.random.uniform(k1, (state_dim, layer_dim), jnp.float32,
                            -bound1, bound1)
    b1 = jax.random.uniform(k2, (1, layer_dim), jnp.float32, -bound1, bound1)

    bound2 = 1.0 / math.sqrt(layer_dim)
    w2 = jax.random.uniform(k3, (layer_dim, layer_dim), jnp.float32,
                            -bound2, bound2)
    b2 = jax.random.uniform(k4, (1, layer_dim), jnp.float32, -bound2, bound2)

    w3 = jax.random.uniform(k5, (layer_dim, 1), jnp.float32, -init_w, init_w)
    b3 = jax.random.uniform(k6, (1, 1), jnp.float32, -init_w, init_w)

    return (w1, b1, w2, b2, w3, b3)


if __name__ == "__main__":
    key = jax.random.PRNGKey(0)
    k_params, k_s1, k_s2, k_s3 = jax.random.split(key, 4)

    state_dim, layer_dim = 16, 32
    params = init_value_network_params(k_params, state_dim, layer_dim)

    # 1) Small batch, f32 compute + f32 epilogue, single grid step.
    s1 = jax.random.normal(k_s1, (8, state_dim), jnp.float32)
    out1 = jax.block_until_ready(value_network_forward(
        s1, params, compute_dtype=jnp.float32, epilogue_dtype=jnp.float32))
    ref1 = value_network_reference(s1, params, jnp.float32, jnp.float32)
    assert out1.shape == (8, 1)
    # Loose tolerance: Mosaic and XLA may use different MXU pass counts for
    # f32 matmuls.
    assert jnp.allclose(out1, ref1, atol=5e-3, rtol=5e-3), \
        float(jnp.max(jnp.abs(out1 - ref1)))

    # 2) Non-aligned batch, bf16 compute, chip-appropriate epilogue, 1 tile.
    edt = _default_epilogue_dtype(jnp.bfloat16)
    s2 = jax.random.normal(k_s2, (300, state_dim), jnp.float32)
    out2 = jax.block_until_ready(value_network_forward(
        s2, params, compute_dtype=jnp.bfloat16, epilogue_dtype=edt))
    ref2 = value_network_reference(s2, params, jnp.bfloat16, edt)
    assert out2.shape == (300, 1)
    assert jnp.allclose(out2, ref2, atol=1e-3, rtol=1e-3), \
        float(jnp.max(jnp.abs(out2 - ref2)))

    # 3) Multi-tile grid (even tile count for v7x megacore), bf16 compute.
    s3 = jax.random.normal(k_s3, (600, state_dim), jnp.float32)
    out3 = jax.block_until_ready(value_network_forward(
        s3, params, tile_b=256, compute_dtype=jnp.bfloat16, epilogue_dtype=edt))
    ref3 = value_network_reference(s3, params, jnp.bfloat16, edt)
    assert out3.shape == (600, 1)
    assert jnp.allclose(out3, ref3, atol=1e-3, rtol=1e-3), \
        float(jnp.max(jnp.abs(out3 - ref3)))

    print("KERNEL_OK")
</pallas_src>

<mosaic_0001>
module attributes {stable_mosaic.version = 11 : i64} {
  func.func @_value_net_kernel(%arg0: i32, %arg1: memref<16x128xf32, #tpu.memory_space<vmem>>, %arg2: memref<32x16xf32, #tpu.memory_space<vmem>>, %arg3: memref<32x1xf32, #tpu.memory_space<vmem>>, %arg4: memref<32x32xf32, #tpu.memory_space<vmem>>, %arg5: memref<32x1xf32, #tpu.memory_space<vmem>>, %arg6: memref<1x32xf32, #tpu.memory_space<vmem>>, %arg7: memref<1x1xf32, #tpu.memory_space<vmem>>, %arg8: memref<1x128xf32, #tpu.memory_space<vmem>>) attributes {dimension_semantics = [#tpu.dimension_semantics<parallel>], iteration_bounds = array<i64: 1>, scalar_prefetch = 0 : i64, scratch_operands = 0 : i64, tpu.core_type = #tpu.core_type<tc>, window_params = [{transform_indices = @transform_0, window_bounds = array<i64: 16, 128>}, {pipeline_mode = #tpu.pipeline_mode<synchronous>, transform_indices = @transform_1, window_bounds = array<i64: 32, 16>}, {pipeline_mode = #tpu.pipeline_mode<synchronous>, transform_indices = @transform_2, window_bounds = array<i64: 32, 1>}, {pipeline_mode = #tpu.pipeline_mode<synchronous>, transform_indices = @transform_3, window_bounds = array<i64: 32, 32>}, {pipeline_mode = #tpu.pipeline_mode<synchronous>, transform_indices = @transform_4, window_bounds = array<i64: 32, 1>}, {pipeline_mode = #tpu.pipeline_mode<synchronous>, transform_indices = @transform_5, window_bounds = array<i64: 1, 32>}, {pipeline_mode = #tpu.pipeline_mode<synchronous>, transform_indices = @transform_6, window_bounds = array<i64: 1, 1>}, {transform_indices = @transform_7, window_bounds = array<i64: 1, 128>}]} {
    %c0 = arith.constant 0 : index
    %c0_0 = arith.constant 0 : index
    %0 = vector.load %arg1[%c0, %c0_0] : memref<16x128xf32, #tpu.memory_space<vmem>>, vector<16x128xf32>
    %c0_1 = arith.constant 0 : index
    %c0_2 = arith.constant 0 : index
    %1 = vector.load %arg2[%c0_1, %c0_2] : memref<32x16xf32, #tpu.memory_space<vmem>>, vector<32x16xf32>
    %cst = arith.constant dense<0.000000e+00> : vector<32x128xf32>
    %2 = tpu.matmul %1, %0, %cst {dimension_numbers = #tpu.dot_dimension_numbers<[1], [0], [0], [1], [0, 0, 1, 1], [], []>} : vector<32x16xf32>, vector<16x128xf32>, vector<32x128xf32> -> vector<32x128xf32>
    %c0_3 = arith.constant 0 : index
    %c0_4 = arith.constant 0 : index
    %3 = vector.load %arg3[%c0_3, %c0_4] : memref<32x1xf32, #tpu.memory_space<vmem>>, vector<32x1xf32>
    %4 = vector.broadcast %3 : vector<32x1xf32> to vector<32x128xf32>
    %5 = arith.addf %2, %4 : vector<32x128xf32>
    %cst_5 = arith.constant 0.000000e+00 : f32
    %6 = vector.broadcast %cst_5 : f32 to vector<32x128xf32>
    %7 = arith.maximumf %5, %6 : vector<32x128xf32>
    %c0_6 = arith.constant 0 : index
    %c0_7 = arith.constant 0 : index
    %8 = vector.load %arg4[%c0_6, %c0_7] : memref<32x32xf32, #tpu.memory_space<vmem>>, vector<32x32xf32>
    %cst_8 = arith.constant dense<0.000000e+00> : vector<32x128xf32>
    %9 = tpu.matmul %8, %7, %cst_8 {dimension_numbers = #tpu.dot_dimension_numbers<[1], [0], [0], [1], [0, 0, 1, 1], [], []>} : vector<32x32xf32>, vector<32x128xf32>, vector<32x128xf32> -> vector<32x128xf32>
    %c0_9 = arith.constant 0 : index
    %c0_10 = arith.constant 0 : index
    %10 = vector.load %arg5[%c0_9, %c0_10] : memref<32x1xf32, #tpu.memory_space<vmem>>, vector<32x1xf32>
    %11 = vector.broadcast %10 : vector<32x1xf32> to vector<32x128xf32>
    %12 = arith.addf %9, %11 : vector<32x128xf32>
    %cst_11 = arith.constant 0.000000e+00 : f32
    %13 = vector.broadcast %cst_11 : f32 to vector<32x128xf32>
    %14 = arith.maximumf %12, %13 : vector<32x128xf32>
    %c0_12 = arith.constant 0 : index
    %c0_13 = arith.constant 0 : index
    %15 = vector.load %arg6[%c0_12, %c0_13] : memref<1x32xf32, #tpu.memory_space<vmem>>, vector<1x32xf32>
    %cst_14 = arith.constant dense<0.000000e+00> : vector<1x128xf32>
    %16 = tpu.matmul %15, %14, %cst_14 {dimension_numbers = #tpu.dot_dimension_numbers<[1], [0], [0], [1], [0, 0, 1, 1], [], []>} : vector<1x32xf32>, vector<32x128xf32>, vector<1x128xf32> -> vector<1x128xf32>
    %c0_15 = arith.constant 0 : index
    %c0_16 = arith.constant 0 : index
    %17 = vector.load %arg7[%c0_15, %c0_16] : memref<1x1xf32, #tpu.memory_space<vmem>>, vector<1x1xf32>
    %18 = vector.broadcast %17 : vector<1x1xf32> to vector<1x128xf32>
    %19 = arith.addf %16, %18 : vector<1x128xf32>
    %c0_17 = arith.constant 0 : index
    %c0_18 = arith.constant 0 : index
    %20 = vector.load %arg8[%c0_17, %c0_18] : memref<1x128xf32, #tpu.memory_space<vmem>>, vector<1x128xf32>
    tpu.vector_store %arg8[%c0_17, %c0_18], %19 {strides = array<i32>} : memref<1x128xf32, #tpu.memory_space<vmem>>, vector<1x128xf32>,
    return
  }
  func.func @transform_0(%arg0: i32) -> (i32, i32) {
    %c0_i32 = arith.constant 0 : i32
    %c0_i32_0 = arith.constant 0 : i32
    return %c0_i32, %arg0 : i32, i32
  }
  func.func @transform_1(%arg0: i32) -> (i32, i32) {
    %c0_i32 = arith.constant 0 : i32
    %c0_i32_0 = arith.constant 0 : i32
    %c0_i32_1 = arith.constant 0 : i32
    return %c0_i32, %c0_i32_0 : i32, i32
  }
  func.func @transform_2(%arg0: i32) -> (i32, i32) {
    %c0_i32 = arith.constant 0 : i32
    %c0_i32_0 = arith.constant 0 : i32
    %c0_i32_1 = arith.constant 0 : i32
    return %c0_i32, %c0_i32_0 : i32, i32
  }
  func.func @transform_3(%arg0: i32) -> (i32, i32) {
    %c0_i32 = arith.constant 0 : i32
    %c0_i32_0 = arith.constant 0 : i32
    %c0_i32_1 = arith.constant 0 : i32
    return %c0_i32, %c0_i32_0 : i32, i32
  }
  func.func @transform_4(%arg0: i32) -> (i32, i32) {
    %c0_i32 = arith.constant 0 : i32
    %c0_i32_0 = arith.constant 0 : i32
    %c0_i32_1 = arith.constant 0 : i32
    return %c0_i32, %c0_i32_0 : i32, i32
  }
  func.func @transform_5(%arg0: i32) -> (i32, i32) {
    %c0_i32 = arith.constant 0 : i32
    %c0_i32_0 = arith.constant 0 : i32
    %c0_i32_1 = arith.constant 0 : i32
    return %c0_i32, %c0_i32_0 : i32, i32
  }
  func.func @transform_6(%arg0: i32) -> (i32, i32) {
    %c0_i32 = arith.constant 0 : i32
    %c0_i32_0 = arith.constant 0 : i32
    %c0_i32_1 = arith.constant 0 : i32
    return %c0_i32, %c0_i32_0 : i32, i32
  }
  func.func @transform_7(%arg0: i32) -> (i32, i32) {
    %c0_i32 = arith.constant 0 : i32
    %c0_i32_0 = arith.constant 0 : i32
    return %c0_i32, %arg0 : i32, i32
  }
}

</mosaic_0001>

<bundles_post_ra>
// kernel: tpu_custom_call.1
= control target key start
LH: loop header
LB: loop body
LE: loop exit
PB: predicated region body
PF: predicated region fallthrough
CT: control target
= control target key end

     0   :  { %s597_s0 = inlined_call_operand.vmem [shape: f32[16,128], index: 0, kind: input, shape index: {}]   ;;  %s598_s1 = inlined_call_operand.vmem [shape: f32[32,16], index: 1, kind: input, shape index: {}]   ;;  %s599_s2 = inlined_call_operand.vmem [shape: f32[32,1], index: 2, kind: input, shape index: {}]   ;;  %s600_s3 = inlined_call_operand.vmem [shape: f32[32,32], index: 3, kind: input, shape index: {}]   ;;  %s601_s4 = inlined_call_operand.vmem [shape: f32[32,1], index: 4, kind: input, shape index: {}]   ;;  %s602_s5 = inlined_call_operand.vmem [shape: f32[1,32], index: 5, kind: input, shape index: {}]   ;;  %s603_s6 = inlined_call_operand.<no memory space> [shape: f32[1,1], index: 6, kind: input, shape index: {}]   ;;  %s604_s7 = inlined_call_operand.hbm [shape: f32[1,128], index: 7, kind: output, shape index: {}]  }
   0x1   :  { %v12_v0 = vstv %s603_s6 }
   0x2   :  { %13 = vst [vmem:[#allocation2] sm:$0x1] %v12_v0 }
   0x3   :  { %v30_v1 = vld [vmem:[%s597_s0 + $0x8] sm:$0xff]  ;;  %v29_v2 = vld [vmem:[%s597_s0] sm:$0xff]  ;;  %vm59_vm0 = vcmask 130048   ;;  %v481_v5 = vmov 0   ;;  %v38_v6 = vld [vmem:[%s599_s2 + $0x18] sm:$0xff] }
   0x4   :  { %v31_v3 = vld [vmem:[%s598_s1] sm:$0xff]  ;;  %418 = vmatprep.subr.mxu0 %v30_v1  ;;  %v32_v4 = vld [vmem:[%s598_s1 + $0x8] sm:$0xff]  ;;  %457 = vset.pattern.permute.xlu0 %v481_v5  ;;  %v33_v7 = vld [vmem:[%s598_s1 + $0x10] sm:$0xff] }
   0x5   :  { %422 = vmatprep.mubr.msk.f32.mxu0 %vm59_vm0, %v31_v3  ;;  %419 = vmatpush3.msra.mxu0 %v30_v1  ;;  %v36_v8 = vld [vmem:[%s599_s2 + $0x8] sm:$0xff]  ;;  %v37_v9 = vld [vmem:[%s599_s2 + $0x10] sm:$0xff] }
   0x6   :  { %420 = vmatprep.subr.mxu0 %v29_v2  ;;  %56 = vperm.xlu0 %457, %v38_v6  }
   0x7   :  { %421 = vmatpush3.msra.mxu0 %v29_v2  ;;  %458 = vset.pattern.permute.xlu1 %v481_v5 }
   0x8   :  { %423 = vmatmul.mubr.msk.f32.vlgmr.msra.gmra.mxu0 %vm59_vm0, %v32_v4  ;;  %46 = vperm.xlu1 %458, %v36_v8  }
   0x9   :  { %14 = vsyncpa [#allocation4], 0  ;;  %425 = vmatprep.mubr.msk.f32.mxu0 %vm59_vm0, %v33_v7  ;;  %v34_v10 = vld [vmem:[%s598_s1 + $0x18] sm:$0xff]  ;;  %v35_v11 = vld [vmem:[%s599_s2] sm:$0xff]  ;;  %vm189_vm1 = vcmask 261120   ;;  %v482_v37 = vmov 0.0   ;;  %v298_v55 = vlaneseq }
   0xa   :  { %51 = vperm.xlu0 %457, %v37_v9   ;;  %v168_v12 = vld [vmem:[%s601_s4 + $0x18] sm:$0xff]  ;;  %v167_v13 = vld [vmem:[%s601_s4 + $0x10] sm:$0xff]  ;;  %v166_v14 = vld [vmem:[%s601_s4 + $0x8] sm:$0xff]  ;;  %442 = vmatprep.subr.mxu0 %v482_v37  ;;  %vm483_vm2 = vmmov 0   ;;  %s484_s11 = smov [#allocation3]  }
   0xb   :  { %v165_v15 = vld [vmem:[%s601_s4] sm:$0xff]  ;;  %v162_v34 = vld [vmem:[%s600_s3 + $0x8] sm:$0xff]  ;;  %v163_v35 = vld [vmem:[%s600_s3 + $0x10] sm:$0xff]  ;;  %v299_v56 = vshrl.u32 %v298_v55, 7  ;;  %s382_s0 = sshll.u32 %s484_s11, 4  ;;  %s383_s0 = int_to_ptr.vmem [resolvable:$true] %s382_s0 }
   0xc   :  { %426 = vmatmul.mubr.msk.f32.gmra.mxu0 %vm59_vm0, %v34_v10  ;;  %41 = vperm.xlu1 %458, %v35_v11   ;;  %v292_v16 = vld [vmem:[#allocation2] sm:$0x1]  ;;  %v164_v36 = vld [vmem:[%s600_s3 + $0x18] sm:$0xff]  ;;  %s459_s12 = scalar_lea.vmem %s383_s0, 16  ;;  %s463_s13 = scalar_lea.vmem %s383_s0, 32 }
   0xd   :  { %v161_v17 = vld [vmem:[%s600_s3] sm:$0xff]  ;;  %450 = vmatprep.mubr.msk.f32.mxu0 %vm483_vm2, %v482_v37  ;;  %v300_v57 = vsub.s32 0, %v299_v56  ;;  %p460_p0 = scmp.ne.s32.totalorder %s383_s0, %s459_s12  ;;  %p464_p1 = scmp.lt.s32.totalorder %s383_s0, %s383_s0 }
   0xe   :  { %186 = vperm.xlu0 %457, %v168_v12   ;;  %436 = vmatprep.mubr.msk.f32.mxu1 %vm189_vm1, %v161_v17  ;;  %v291_v54 = vld [vmem:[%s602_s5] sm:$0x1]  ;;  %p465_p2 = scmp.lt.s32.totalorder %s463_s13, %s459_s12 }
  0x10   :  { %181 = vperm.xlu1 %458, %v167_v13   ;;  %p466_p3 = por %p465_p2, %p464_p1 }
  0x12   :  { %176 = vperm.xlu0 %457, %v166_v14   ;;  %p467_p4 = pnand %p466_p3, %p460_p0 }
  0x14   :  { %171 = vperm.xlu1 %458, %v165_v15  }
  0x16   :  { %295 = vperm.xlu0 %457, %v292_v16  }
  0x81   :  { %v57_v18 = vpop.permute.xlu0 %56 }
  0x83   :  { %v47_v20 = vpop.permute.xlu1 %46 }
  0x85   :  { %v52_v24 = vpop.permute.xlu0 %51 }
  0x87   :  { %v42_v29 = vpop.permute.xlu1 %41 }
  0x89   :  { %v187_v38 = vpop.permute.xlu0 %186 }
  0x8b   :  { %v182_v40 = vpop.permute.xlu1 %181 }
  0x8d   :  { %v177_v44 = vpop.permute.xlu0 %176 }
  0x8f   :  { %v172_v49 = vpop.permute.xlu1 %171 }
  0x91   :  { %v296_v58 = vpop.permute.xlu0 %295 }
  0x92   :  { %v301_v59 = vrot.slane %v296_v58, %v300_v57 }
  0xc8   :  { %v424_v19 = vpop.f32.mrf.mxu0 }
  0xc9   :  { %v144_v26 = vadd.f32 %v424_v19, %v47_v20 }
  0xca   :  { %v138_v21 = vpop.f32.mrf.mxu0 }
  0xcb   :  { %v139_v30 = vadd.f32 %v138_v21, %v42_v29  ;;  %v158_v32 = vmax.f32 %v144_v26, 0.0 }
  0xcc   :  { %v427_v22 = vpop.f32.mrf.mxu0 }
  0xcd   :  { %v154_v23 = vadd.f32 %v427_v22, %v57_v18  ;;  %v157_v33 = vmax.f32 %v139_v30, 0.0 }
  0xce   :  { %v148_v25 = vpop.f32.mrf.mxu0 }
  0xcf   :  { %v160_v27 = vmax.f32 %v154_v23, 0.0  ;;  %v149_v28 = vadd.f32 %v148_v25, %v52_v24 }
  0xd1   :  { %v159_v31 = vmax.f32 %v149_v28, 0.0  ;;  %428 = vmatprep.subr.mxu1 %v160_v27 }
  0xd2   :  { %429 = vmatpush3.msra.mxu1 %v160_v27 }
  0xd3   :  { %430 = vmatprep.subr.mxu1 %v159_v31 }
  0xd4   :  { %431 = vmatpush3.msra.mxu1 %v159_v31 }
  0xd5   :  { %432 = vmatprep.subr.mxu1 %v158_v32 }
  0xd6   :  { %433 = vmatpush3.msra.mxu1 %v158_v32 }
  0xd7   :  { %434 = vmatprep.subr.mxu1 %v157_v33 }
  0xd8   :  { %435 = vmatpush3.msra.mxu1 %v157_v33 }
  0xd9   :  { %437 = vmatmul.mubr.msk.f32.vlgmr.msra.gmra.mxu1 %vm189_vm1, %v162_v34 }
  0xda   :  { %439 = vmatprep.mubr.msk.f32.mxu1 %vm189_vm1, %v163_v35 }
  0xdd   :  { %440 = vmatmul.mubr.msk.f32.gmra.mxu1 %vm189_vm1, %v164_v36 }
 0x199   :  { %v438_v39 = vpop.f32.mrf.mxu1 }
 0x19a   :  { %v274_v46 = vadd.f32 %v438_v39, %v177_v44 }
 0x19b   :  { %v268_v41 = vpop.f32.mrf.mxu1 }
 0x19c   :  { %v269_v50 = vadd.f32 %v268_v41, %v172_v49  ;;  %v288_v52 = vmax.f32 %v274_v46, 0.0 }
 0x19d   :  { %v441_v42 = vpop.f32.mrf.mxu1 }
 0x19e   :  { %v284_v43 = vadd.f32 %v441_v42, %v187_v38  ;;  %v287_v53 = vmax.f32 %v269_v50, 0.0 }
 0x19f   :  { %v278_v45 = vpop.f32.mrf.mxu1 }
 0x1a0   :  { %v290_v47 = vmax.f32 %v284_v43, 0.0  ;;  %v279_v48 = vadd.f32 %v278_v45, %v182_v40 }
 0x1a2   :  { %v289_v51 = vmax.f32 %v279_v48, 0.0  ;;  %443 = vmatpush3.msra.mxu0 %v290_v47 }
 0x1a3   :  { %444 = vmatprep.subr.mxu0 %v482_v37 }
 0x1a4   :  { %445 = vmatpush3.msra.mxu0 %v289_v51 }
 0x1a5   :  { %446 = vmatprep.subr.mxu0 %v482_v37 }
 0x1a6   :  { %447 = vmatpush3.msra.mxu0 %v288_v52 }
 0x1a7   :  { %448 = vmatprep.subr.mxu0 %v482_v37 }
 0x1a8   :  { %449 = vmatpush3.msra.mxu0 %v287_v53 }
 0x1a9   :  { %451 = vmatmul.mubr.msk.f32.vlgmr.msra.gmra.mxu0 %vm189_vm1, %v291_v54 }
 0x269   :  { %v371_v60 = vpop.f32.mrf.mxu0 }
 0x26a   :  { %v372_v61 = vadd.f32 %v371_v60, %v301_v59 }
 0x26b   :  { %v452_v62 = vpop.f32.mrf.mxu0 }
 0x26c   :  { %375 = vst [vmem:[#allocation3] sm:$0x1] %v372_v61 }
 0x26d   :  { %470 = shalt.err (!%p467_p4)
}
 0x26e   :  { %385 = dma.vmem_to_hbm [thread:$0]  %s383_s0, 16, %s604_s7, [#allocation4]  }
 0x26f   :  { %479 = dma.done.wait [#allocation4], 16  }
 0x270   :  { %480 = vsyncadd [#allocation4], 4294967280 }
 0x271   :  { %389 = vsyncpa [#allocation4], 1 }

</bundles_post_ra>
